<compile_context>
chip_gen: v5e
topology: v5e:2x2
jax: 0.10.0
libtpu: 0.0.40
codegen_flags: <defaults>
</compile_context>

<pallas_src>
import math

import jax
import jax.numpy as jnp
from jax import lax
from jax.experimental import pallas as pl
from jax.experimental.pallas import tpu as pltpu

# ---------------- config (small, consistent with the module) ----------------
VOCAB = 64
BLOCK_SIZE = 16
N_LAYER = 2
N_HEAD = 2
N_EMBD = 32
HEAD_DIM = N_EMBD // N_HEAD
EPS = 1e-5
VPAD = max(128, ((VOCAB + 127) // 128) * 128)     # lane-dense logits width


# ---------------------------- in-kernel helpers ------------------------------
def _scale_norm(x):
    # ScaleNorm without the scalar gain (gain folded into the next weight matrix).
    nrm = jnp.sqrt(jnp.sum(x * x, axis=-1, keepdims=True))
    return x * pl.reciprocal(jnp.maximum(nrm, EPS), approx=True)


def _transformer_stack(x, wqkv_ref, wproj_ref, wfc_ref, wfc2_ref):
    """All N_LAYER pre-norm blocks on one batch element. x: (T, C) f32."""
    T, C = x.shape
    scale = 1.0 / math.sqrt(HEAD_DIM)

    # causal mask hoisted once for all layers / heads
    ti = lax.broadcasted_iota(jnp.int32, (T, T), 0)   # query index
    si = lax.broadcasted_iota(jnp.int32, (T, T), 1)   # key index
    causal = si <= ti

    for l in range(N_LAYER):                          # static unroll (N_LAYER = 2)
        # ----- ln_1 + causal multi-head self-attention -----
        xn = _scale_norm(x).astype(jnp.bfloat16)
        qkv = jnp.dot(xn, wqkv_ref[l],
                      preferred_element_type=jnp.float32)             # (T, 3C) f32

        attn = None
        for h in range(N_HEAD):                       # static unroll (N_HEAD = 2)
            lo = h * HEAD_DIM
            qh = qkv[:, lo:lo + HEAD_DIM].astype(jnp.bfloat16)
            kh = qkv[:, C + lo:C + lo + HEAD_DIM].astype(jnp.bfloat16)
            vh = qkv[:, 2 * C + lo:2 * C + lo + HEAD_DIM].astype(jnp.bfloat16)
            s = jnp.einsum('td,sd->ts', qh, kh,
                           preferred_element_type=jnp.float32) * scale
            s = jnp.where(causal, s, -1e30)           # mask / softmax stay in f32
            m = jnp.max(s, axis=-1, keepdims=True)
            p = jnp.exp(s - m)
            p = p * pl.reciprocal(jnp.sum(p, axis=-1, keepdims=True), approx=True)
            yh = jnp.dot(p.astype(jnp.bfloat16), vh,
                         preferred_element_type=jnp.float32)          # (T, D)
            # head re-merge folded into a per-head row-slice of wproj (no concat)
            ph = jnp.dot(yh.astype(jnp.bfloat16),
                         wproj_ref[l, lo:lo + HEAD_DIM, :],
                         preferred_element_type=jnp.float32)          # (T, C)
            attn = ph if attn is None else attn + ph
        x = x + attn                                  # residual (dropout = 0)

        # ----- ln_2 + MLP -----
        xn2 = _scale_norm(x).astype(jnp.bfloat16)
        h1 = jnp.dot(xn2, wfc_ref[l], preferred_element_type=jnp.float32)   # (T, 4C)
        h1 = jax.nn.gelu(h1, approximate=True)  # TODO(synk): nn.GELU() default is exact erf
        x = x + jnp.dot(h1.astype(jnp.bfloat16), wfc2_ref[l],
                        preferred_element_type=jnp.float32)
    return x


# -------------- fused kernels (one batch element per grid step) --------------
def gazella_infer_kernel(x_ref, wqkv_ref, wproj_ref, wfc_ref, wfc2_ref, wlm_ref,
                         logits_ref):
    x = _transformer_stack(x_ref[0], wqkv_ref, wproj_ref, wfc_ref, wfc2_ref)
    T = x.shape[0]
    xl = _scale_norm(x[T - 1:T, :]).astype(jnp.bfloat16)      # ln_f, last position only
    # lm_head weight stored pre-transposed (C, VPAD) -> plain MXU matmul
    logits_ref[0] = jnp.dot(xl, wlm_ref[...],
                            preferred_element_type=jnp.float32)       # (1, VPAD)


def gazella_loss_kernel(x_ref, tgt_ref, wqkv_ref, wproj_ref, wfc_ref, wfc2_ref,
                        wlm_ref, logits_ref, stats_ref):
    x = _transformer_stack(x_ref[0], wqkv_ref, wproj_ref, wfc_ref, wfc2_ref)
    xf = _scale_norm(x).astype(jnp.bfloat16)                  # ln_f, all positions
    logits = jnp.dot(xf, wlm_ref[...],
                     preferred_element_type=jnp.float32)      # (T, VPAD) f32
    logits_ref[0] = logits

    # per-batch cross-entropy partials (ignore_index = -1); padded vocab masked out
    T = logits.shape[0]
    col = lax.broadcasted_iota(jnp.int32, (T, VPAD), 1)
    lmask = jnp.where(col < VOCAB, logits, -1e30)
    m = jnp.max(lmask, axis=-1, keepdims=True)
    lse = m + jnp.log(jnp.sum(jnp.exp(lmask - m), axis=-1, keepdims=True))
    tgt = tgt_ref[0]                                          # (T, 1) int32
    tgt_logit = jnp.sum(jnp.where(col == tgt, logits, 0.0), axis=-1, keepdims=True)
    valid = (tgt >= 0).astype(jnp.float32)                    # (T, 1)
    lsum = jnp.sum((lse - tgt_logit) * valid, axis=0, keepdims=True)   # (1, 1)
    lcnt = jnp.sum(valid, axis=0, keepdims=True)                       # (1, 1)
    # pack (loss_sum, valid_count) into one lane-dense (1, 128) store
    lane = lax.broadcasted_iota(jnp.int32, (1, VPAD), 1)
    stats_ref[0] = (jnp.where(lane == 0, lsum, 0.0)
                    + jnp.where(lane == 1, lcnt, 0.0))


# ------------------------------ parameters -----------------------------------
def init_params(key):
    std = 0.02
    proj_std = 0.02 / math.sqrt(2 * N_LAYER)                  # c_proj.weight re-init
    ks = jax.random.split(key, 2 + N_LAYER)
    p = {
        'wte': std * jax.random.normal(ks[0], (VOCAB, N_EMBD), jnp.float32),
        'wpe': std * jax.random.normal(ks[1], (BLOCK_SIZE, N_EMBD), jnp.float32),
        'gf': jnp.full((1,), math.sqrt(N_EMBD), jnp.float32),
        'blocks': [],
    }
    for l in range(N_LAYER):
        lk = jax.random.split(ks[2 + l], 4)
        p['blocks'].append(dict(
            g1=jnp.full((1,), math.sqrt(N_EMBD), jnp.float32),
            wqkv=std * jax.random.normal(lk[0], (N_EMBD, 3 * N_EMBD), jnp.float32),
            wproj=proj_std * jax.random.normal(lk[1], (N_EMBD, N_EMBD), jnp.float32),
            g2=jnp.full((1,), math.sqrt(N_EMBD), jnp.float32),
            wfc=std * jax.random.normal(lk[2], (N_EMBD, 4 * N_EMBD), jnp.float32),
            wfc2=proj_std * jax.random.normal(lk[3], (4 * N_EMBD, N_EMBD), jnp.float32),
        ))
    return p                                                  # lm_head weight == wte (tied)


def pack_params(p):
    """Stack per-layer weights, fold ScaleNorm gains, cast MXU operands to bf16,
    pre-transpose + zero-pad the tied lm_head matrix to lane-dense (C, VPAD)."""
    wqkv = jnp.stack([b['g1'][0] * b['wqkv'] for b in p['blocks']]).astype(jnp.bfloat16)
    wproj = jnp.stack([b['wproj'] for b in p['blocks']]).astype(jnp.bfloat16)
    wfc = jnp.stack([b['g2'][0] * b['wfc'] for b in p['blocks']]).astype(jnp.bfloat16)
    wfc2 = jnp.stack([b['wfc2'] for b in p['blocks']]).astype(jnp.bfloat16)
    wte_lm = jnp.zeros((VPAD, N_EMBD), jnp.float32).at[:VOCAB].set(p['gf'][0] * p['wte'])
    wte_lm_t = wte_lm.T                                       # (C, VPAD): row-major matmul
    return {
        'wte': p['wte'], 'wpe': p['wpe'],                     # f32 tables (gather glue)
        'wqkv': wqkv, 'wproj': wproj, 'wfc': wfc, 'wfc2': wfc2,
        'wlm': wte_lm_t.astype(jnp.bfloat16),                 # gf-folded, padded, tied, transposed
    }


# ------------------------------ forward glue ---------------------------------
def _full_spec(shape):
    n = len(shape)
    return pl.BlockSpec(tuple(shape), lambda b, _n=n: (0,) * _n)   # resident across grid


def _cost_estimate(B, T):
    d = N_EMBD
    per_layer = (2 * T * d * 3 * d                            # qkv
                 + N_HEAD * 4 * T * T * HEAD_DIM              # scores + PV
                 + 2 * T * d * d                              # proj
                 + 2 * T * d * 4 * d * 2)                     # fc1 + fc2
    flops = B * (N_LAYER * per_layer + 2 * T * d * VPAD)
    transcendentals = B * (N_LAYER * (N_HEAD * T * T + T * 4 * d) + T * VPAD)
    w_bytes = 2 * (N_LAYER * (3 * d * d + d * d + 4 * d * d + 4 * d * d) + VPAD * d)
    bytes_accessed = B * T * d * 4 + B * T * VPAD * 4 + w_bytes
    return pl.CostEstimate(flops=flops, transcendentals=transcendentals,
                           bytes_accessed=bytes_accessed)


def gazella_forward(packed, idx, targets=None):
    B, T = idx.shape
    assert T <= BLOCK_SIZE, f'Cannot forward sequence of length {T}'

    # token + position embedding gather (plain-JAX glue; dropout p=0 -> identity)
    x = jnp.take(packed['wte'], idx, axis=0) + packed['wpe'][:T][None]   # (B, T, C) f32

    w_args = (packed['wqkv'], packed['wproj'], packed['wfc'], packed['wfc2'],
              packed['wlm'])
    w_specs = [_full_spec(w.shape) for w in w_args]
    x_spec = pl.BlockSpec((1, T, N_EMBD), lambda b: (b, 0, 0))
    cparams = pltpu.CompilerParams(dimension_semantics=("parallel",))

    if targets is not None:
        tgt = targets.reshape(B, T, 1).astype(jnp.int32)
        tgt_spec = pl.BlockSpec((1, T, 1), lambda b: (b, 0, 0))
        logits_pad, stats = pl.pallas_call(
            gazella_loss_kernel,
            grid=(B,),
            in_specs=[x_spec, tgt_spec] + w_specs,
            out_shape=(jax.ShapeDtypeStruct((B, T, VPAD), jnp.float32),
                       jax.ShapeDtypeStruct((B, 1, VPAD), jnp.float32)),
            out_specs=(pl.BlockSpec((1, T, VPAD), lambda b: (b, 0, 0)),
                       pl.BlockSpec((1, 1, VPAD), lambda b: (b, 0, 0))),
            compiler_params=cparams,
            cost_estimate=_cost_estimate(B, T),
        )(x, tgt, *w_args)
        logits = logits_pad[:, :, :VOCAB]
        loss_sum = jnp.sum(stats[:, 0, 0])
        valid_cnt = jnp.sum(stats[:, 0, 1])
        loss = loss_sum / jnp.maximum(valid_cnt, 1.0)
        return logits, loss
    else:
        logits_pad = pl.pallas_call(
            gazella_infer_kernel,
            grid=(B,),
            in_specs=[x_spec] + w_specs,
            out_shape=jax.ShapeDtypeStruct((B, 1, VPAD), jnp.float32),
            out_specs=pl.BlockSpec((1, 1, VPAD), lambda b: (b, 0, 0)),
            compiler_params=cparams,
            cost_estimate=_cost_estimate(B, T),
        )(x, *w_args)
        return logits_pad[:, :, :VOCAB], None


# ---------------------------------- main -------------------------------------
if __name__ == "__main__":
    key = jax.random.PRNGKey(0)
    pkey, ikey, tkey = jax.random.split(key, 3)
    params = init_params(pkey)
    packed = pack_params(params)

    B, T = 2, 8
    idx = jax.random.randint(ikey, (B, T), 0, VOCAB, dtype=jnp.int32)

    fwd = jax.jit(gazella_forward)

    # inference branch (targets=None): logits only for the last position
    logits, loss = fwd(packed, idx)
    jax.block_until_ready(logits)
    assert logits.shape == (B, 1, VOCAB) and loss is None

    # training branch (with targets): full logits + mean cross-entropy (ignore_index=-1)
    targets = jax.random.randint(tkey, (B, T), 0, VOCAB, dtype=jnp.int32)
    targets = targets.at[0, 0].set(-1)                 # exercise ignore_index=-1
    logits2, loss2 = fwd(packed, idx, targets)
    jax.block_until_ready((logits2, loss2))
    assert logits2.shape == (B, T, VOCAB)
    assert bool(jnp.isfinite(loss2))

    print("KERNEL_OK")
</pallas_src>

<mosaic_0001>
module attributes {stable_mosaic.version = 11 : i64} {
  func.func @gazella_infer_kernel(%arg0: i32, %arg1: memref<1x8x32xf32, #tpu.memory_space<vmem>>, %arg2: memref<2x32x96xbf16, #tpu.memory_space<vmem>>, %arg3: memref<2x32x32xbf16, #tpu.memory_space<vmem>>, %arg4: memref<2x32x128xbf16, #tpu.memory_space<vmem>>, %arg5: memref<2x128x32xbf16, #tpu.memory_space<vmem>>, %arg6: memref<32x128xbf16, #tpu.memory_space<vmem>>, %arg7: memref<1x1x128xf32, #tpu.memory_space<vmem>>) attributes {dimension_semantics = [#tpu.dimension_semantics<parallel>], iteration_bounds = array<i64: 2>, scalar_prefetch = 0 : i64, scratch_operands = 0 : i64, tpu.core_type = #tpu.core_type<tc>, window_params = [{transform_indices = @transform_0, window_bounds = array<i64: 1, 8, 32>}, {pipeline_mode = #tpu.pipeline_mode<synchronous>, transform_indices = @transform_1, window_bounds = array<i64: 2, 32, 96>}, {pipeline_mode = #tpu.pipeline_mode<synchronous>, transform_indices = @transform_2, window_bounds = array<i64: 2, 32, 32>}, {pipeline_mode = #tpu.pipeline_mode<synchronous>, transform_indices = @transform_3, window_bounds = array<i64: 2, 32, 128>}, {pipeline_mode = #tpu.pipeline_mode<synchronous>, transform_indices = @transform_4, window_bounds = array<i64: 2, 128, 32>}, {pipeline_mode = #tpu.pipeline_mode<synchronous>, transform_indices = @transform_5, window_bounds = array<i64: 32, 128>}, {transform_indices = @transform_6, window_bounds = array<i64: 1, 1, 128>}]} {
    %c0 = arith.constant 0 : index
    %c0_0 = arith.constant 0 : index
    %c0_1 = arith.constant 0 : index
    %0 = vector.load %arg1[%c0, %c0_0, %c0_1] : memref<1x8x32xf32, #tpu.memory_space<vmem>>, vector<1x8x32xf32>
    %1 = vector.shape_cast %0 : vector<1x8x32xf32> to vector<8x32xf32>
    %2 = tpu.iota {dimensions = array<i32: 0>} : vector<8x8xi32>
    %3 = tpu.iota {dimensions = array<i32: 1>} : vector<8x8xi32>
    %4 = arith.cmpi sle, %3, %2 : vector<8x8xi32>
    %5 = arith.mulf %1, %1 : vector<8x32xf32>
    %cst = arith.constant dense<0.000000e+00> : vector<8xf32>
    %6 = vector.multi_reduction <add>, %5, %cst [1] : vector<8x32xf32> to vector<8xf32>
    %7 = vector.shape_cast %6 : vector<8xf32> to vector<8x1xf32>
    %8 = math.sqrt %7 : vector<8x1xf32>
    %cst_2 = arith.constant 9.99999974E-6 : f32
    %9 = vector.broadcast %cst_2 : f32 to vector<8x1xf32>
    %10 = arith.maximumf %8, %9 : vector<8x1xf32>
    %11 = tpu.reciprocal %10 {approx = true} : vector<8x1xf32> -> vector<8x1xf32>
    %12 = vector.broadcast %11 : vector<8x1xf32> to vector<8x32xf32>
    %13 = arith.mulf %1, %12 : vector<8x32xf32>
    %14 = arith.truncf %13 : vector<8x32xf32> to vector<8x32xbf16>
    %c0_3 = arith.constant 0 : index
    %c0_4 = arith.constant 0 : index
    %c0_5 = arith.constant 0 : index
    %15 = vector.load %arg2[%c0_3, %c0_4, %c0_5] : memref<2x32x96xbf16, #tpu.memory_space<vmem>>, vector<1x32x96xbf16>
    %16 = vector.shape_cast %15 : vector<1x32x96xbf16> to vector<32x96xbf16>
    %cst_6 = arith.constant dense<0.000000e+00> : vector<8x96xf32>
    %17 = tpu.matmul %14, %16, %cst_6 {dimension_numbers = #tpu.dot_dimension_numbers<[1], [0], [0], [1], [0, 0, 1, 1], [], []>} : vector<8x32xbf16>, vector<32x96xbf16>, vector<8x96xf32> -> vector<8x96xf32>
    %18 = vector.extract_strided_slice %17 {offsets = [0, 0], sizes = [8, 16], strides = [1, 1]} : vector<8x96xf32> to vector<8x16xf32>
    %19 = arith.truncf %18 : vector<8x16xf32> to vector<8x16xbf16>
    %20 = vector.extract_strided_slice %17 {offsets = [0, 32], sizes = [8, 16], strides = [1, 1]} : vector<8x96xf32> to vector<8x16xf32>
    %21 = arith.truncf %20 : vector<8x16xf32> to vector<8x16xbf16>
    %22 = vector.extract_strided_slice %17 {offsets = [0, 64], sizes = [8, 16], strides = [1, 1]} : vector<8x96xf32> to vector<8x16xf32>
    %23 = arith.truncf %22 : vector<8x16xf32> to vector<8x16xbf16>
    "tpu.trace_start"() <{level = 10 : i32, message = "td,sd->ts"}> : () -> ()
    %cst_7 = arith.constant dense<0.000000e+00> : vector<8x8xf32>
    %24 = tpu.matmul %19, %21, %cst_7 {dimension_numbers = #tpu.dot_dimension_numbers<[1], [1], [0], [0], [0, 0, 1, 0], [], []>} : vector<8x16xbf16>, vector<8x16xbf16>, vector<8x8xf32> -> vector<8x8xf32>
    "tpu.trace_stop"() : () -> ()
    %cst_8 = arith.constant 2.500000e-01 : f32
    %25 = vector.broadcast %cst_8 : f32 to vector<8x8xf32>
    %26 = arith.mulf %24, %25 : vector<8x8xf32>
    %cst_9 = arith.constant -1.000000e+30 : f32
    %27 = vector.broadcast %cst_9 : f32 to vector<8x8xf32>
    %28 = arith.select %4, %26, %27 : vector<8x8xi1>, vector<8x8xf32>
    %cst_10 = arith.constant dense<0xFF800000> : vector<8xf32>
    %29 = vector.multi_reduction <maximumf>, %28, %cst_10 [1] : vector<8x8xf32> to vector<8xf32>
    %30 = vector.shape_cast %29 : vector<8xf32> to vector<8x1xf32>
    %31 = vector.broadcast %30 : vector<8x1xf32> to vector<8x8xf32>
    %32 = arith.subf %28, %31 : vector<8x8xf32>
    %33 = math.exp %32 : vector<8x8xf32>
    %cst_11 = arith.constant dense<0.000000e+00> : vector<8xf32>
    %34 = vector.multi_reduction <add>, %33, %cst_11 [1] : vector<8x8xf32> to vector<8xf32>
    %35 = vector.shape_cast %34 : vector<8xf32> to vector<8x1xf32>
    %36 = tpu.reciprocal %35 {approx = true} : vector<8x1xf32> -> vector<8x1xf32>
    %37 = vector.broadcast %36 : vector<8x1xf32> to vector<8x8xf32>
    %38 = arith.mulf %33, %37 : vector<8x8xf32>
    %39 = arith.truncf %38 : vector<8x8xf32> to vector<8x8xbf16>
    %cst_12 = arith.constant dense<0.000000e+00> : vector<8x16xf32>
    %40 = tpu.matmul %39, %23, %cst_12 {dimension_numbers = #tpu.dot_dimension_numbers<[1], [0], [0], [1], [0, 0, 1, 1], [], []>} : vector<8x8xbf16>, vector<8x16xbf16>, vector<8x16xf32> -> vector<8x16xf32>
    %41 = arith.truncf %40 : vector<8x16xf32> to vector<8x16xbf16>
    %c0_13 = arith.constant 0 : index
    %c0_14 = arith.constant 0 : index
    %c0_15 = arith.constant 0 : index
    %42 = vector.load %arg3[%c0_13, %c0_14, %c0_15] : memref<2x32x32xbf16, #tpu.memory_space<vmem>>, vector<1x16x32xbf16>
    %43 = vector.shape_cast %42 : vector<1x16x32xbf16> to vector<16x32xbf16>
    %cst_16 = arith.constant dense<0.000000e+00> : vector<8x32xf32>
    %44 = tpu.matmul %41, %43, %cst_16 {dimension_numbers = #tpu.dot_dimension_numbers<[1], [0], [0], [1], [0, 0, 1, 1], [], []>} : vector<8x16xbf16>, vector<16x32xbf16>, vector<8x32xf32> -> vector<8x32xf32>
    %45 = vector.extract_strided_slice %17 {offsets = [0, 16], sizes = [8, 16], strides = [1, 1]} : vector<8x96xf32> to vector<8x16xf32>
    %46 = arith.truncf %45 : vector<8x16xf32> to vector<8x16xbf16>
    %47 = vector.extract_strided_slice %17 {offsets = [0, 48], sizes = [8, 16], strides = [1, 1]} : vector<8x96xf32> to vector<8x16xf32>
    %48 = arith.truncf %47 : vector<8x16xf32> to vector<8x16xbf16>
    %49 = vector.extract_strided_slice %17 {offsets = [0, 80], sizes = [8, 16], strides = [1, 1]} : vector<8x96xf32> to vector<8x16xf32>
    %50 = arith.truncf %49 : vector<8x16xf32> to vector<8x16xbf16>
    "tpu.trace_start"() <{level = 10 : i32, message = "td,sd->ts"}> : () -> ()
    %cst_17 = arith.constant dense<0.000000e+00> : vector<8x8xf32>
    %51 = tpu.matmul %46, %48, %cst_17 {dimension_numbers = #tpu.dot_dimension_numbers<[1], [1], [0], [0], [0, 0, 1, 0], [], []>} : vector<8x16xbf16>, vector<8x16xbf16>, vector<8x8xf32> -> vector<8x8xf32>
    "tpu.trace_stop"() : () -> ()
    %cst_18 = arith.constant 2.500000e-01 : f32
    %52 = vector.broadcast %cst_18 : f32 to vector<8x8xf32>
    %53 = arith.mulf %51, %52 : vector<8x8xf32>
    %cst_19 = arith.constant -1.000000e+30 : f32
    %54 = vector.broadcast %cst_19 : f32 to vector<8x8xf32>
    %55 = arith.select %4, %53, %54 : vector<8x8xi1>, vector<8x8xf32>
    %cst_20 = arith.constant dense<0xFF800000> : vector<8xf32>
    %56 = vector.multi_reduction <maximumf>, %55, %cst_20 [1] : vector<8x8xf32> to vector<8xf32>
    %57 = vector.shape_cast %56 : vector<8xf32> to vector<8x1xf32>
    %58 = vector.broadcast %57 : vector<8x1xf32> to vector<8x8xf32>
    %59 = arith.subf %55, %58 : vector<8x8xf32>
    %60 = math.exp %59 : vector<8x8xf32>
    %cst_21 = arith.constant dense<0.000000e+00> : vector<8xf32>
    %61 = vector.multi_reduction <add>, %60, %cst_21 [1] : vector<8x8xf32> to vector<8xf32>
    %62 = vector.shape_cast %61 : vector<8xf32> to vector<8x1xf32>
    %63 = tpu.reciprocal %62 {approx = true} : vector<8x1xf32> -> vector<8x1xf32>
    %64 = vector.broadcast %63 : vector<8x1xf32> to vector<8x8xf32>
    %65 = arith.mulf %60, %64 : vector<8x8xf32>
    %66 = arith.truncf %65 : vector<8x8xf32> to vector<8x8xbf16>
    %cst_22 = arith.constant dense<0.000000e+00> : vector<8x16xf32>
    %67 = tpu.matmul %66, %50, %cst_22 {dimension_numbers = #tpu.dot_dimension_numbers<[1], [0], [0], [1], [0, 0, 1, 1], [], []>} : vector<8x8xbf16>, vector<8x16xbf16>, vector<8x16xf32> -> vector<8x16xf32>
    %68 = arith.truncf %67 : vector<8x16xf32> to vector<8x16xbf16>
    %c0_23 = arith.constant 0 : index
    %c16 = arith.constant 16 : index
    %c0_24 = arith.constant 0 : index
    %69 = vector.load %arg3[%c0_23, %c16, %c0_24] : memref<2x32x32xbf16, #tpu.memory_space<vmem>>, vector<1x16x32xbf16>
    %70 = vector.shape_cast %69 : vector<1x16x32xbf16> to vector<16x32xbf16>
    %cst_25 = arith.constant dense<0.000000e+00> : vector<8x32xf32>
    %71 = tpu.matmul %68, %70, %cst_25 {dimension_numbers = #tpu.dot_dimension_numbers<[1], [0], [0], [1], [0, 0, 1, 1], [], []>} : vector<8x16xbf16>, vector<16x32xbf16>, vector<8x32xf32> -> vector<8x32xf32>
    %72 = arith.addf %44, %71 : vector<8x32xf32>
    %73 = arith.addf %1, %72 : vector<8x32xf32>
    %74 = arith.mulf %73, %73 : vector<8x32xf32>
    %cst_26 = arith.constant dense<0.000000e+00> : vector<8xf32>
    %75 = vector.multi_reduction <add>, %74, %cst_26 [1] : vector<8x32xf32> to vector<8xf32>
    %76 = vector.shape_cast %75 : vector<8xf32> to vector<8x1xf32>
    %77 = math.sqrt %76 : vector<8x1xf32>
    %cst_27 = arith.constant 9.99999974E-6 : f32
    %78 = vector.broadcast %cst_27 : f32 to vector<8x1xf32>
    %79 = arith.maximumf %77, %78 : vector<8x1xf32>
    %80 = tpu.reciprocal %79 {approx = true} : vector<8x1xf32> -> vector<8x1xf32>
    %81 = vector.broadcast %80 : vector<8x1xf32> to vector<8x32xf32>
    %82 = arith.mulf %73, %81 : vector<8x32xf32>
    %83 = arith.truncf %82 : vector<8x32xf32> to vector<8x32xbf16>
    %c0_28 = arith.constant 0 : index
    %c0_29 = arith.constant 0 : index
    %c0_30 = arith.constant 0 : index
    %84 = vector.load %arg4[%c0_28, %c0_29, %c0_30] : memref<2x32x128xbf16, #tpu.memory_space<vmem>>, vector<1x32x128xbf16>
    %85 = vector.shape_cast %84 : vector<1x32x128xbf16> to vector<32x128xbf16>
    %cst_31 = arith.constant dense<0.000000e+00> : vector<8x128xf32>
    %86 = tpu.matmul %83, %85, %cst_31 {dimension_numbers = #tpu.dot_dimension_numbers<[1], [0], [0], [1], [0, 0, 1, 1], [], []>} : vector<8x32xbf16>, vector<32x128xbf16>, vector<8x128xf32> -> vector<8x128xf32>
    %87 = arith.mulf %86, %86 : vector<8x128xf32>
    %88 = arith.mulf %86, %87 : vector<8x128xf32>
    %cst_32 = arith.constant 4.471500e-02 : f32
    %89 = vector.broadcast %cst_32 : f32 to vector<8x128xf32>
    %90 = arith.mulf %89, %88 : vector<8x128xf32>
    %91 = arith.addf %86, %90 : vector<8x128xf32>
    %cst_33 = arith.constant 0.797884583 : f32
    %92 = vector.broadcast %cst_33 : f32 to vector<8x128xf32>
    %93 = arith.mulf %92, %91 : vector<8x128xf32>
    %94 = math.tanh %93 : vector<8x128xf32>
    %cst_34 = arith.constant 1.000000e+00 : f32
    %95 = vector.broadcast %cst_34 : f32 to vector<8x128xf32>
    %96 = arith.addf %95, %94 : vector<8x128xf32>
    %cst_35 = arith.constant 5.000000e-01 : f32
    %97 = vector.broadcast %cst_35 : f32 to vector<8x128xf32>
    %98 = arith.mulf %97, %96 : vector<8x128xf32>
    %99 = arith.mulf %86, %98 : vector<8x128xf32>
    %100 = arith.truncf %99 : vector<8x128xf32> to vector<8x128xbf16>
    %c0_36 = arith.constant 0 : index
    %c0_37 = arith.constant 0 : index
    %c0_38 = arith.constant 0 : index
    %101 = vector.load %arg5[%c0_36, %c0_37, %c0_38] : memref<2x128x32xbf16, #tpu.memory_space<vmem>>, vector<1x128x32xbf16>
    %102 = vector.shape_cast %101 : vector<1x128x32xbf16> to vector<128x32xbf16>
    %cst_39 = arith.constant dense<0.000000e+00> : vector<8x32xf32>
    %103 = tpu.matmul %100, %102, %cst_39 {dimension_numbers = #tpu.dot_dimension_numbers<[1], [0], [0], [1], [0, 0, 1, 1], [], []>} : vector<8x128xbf16>, vector<128x32xbf16>, vector<8x32xf32> -> vector<8x32xf32>
    %104 = arith.addf %73, %103 : vector<8x32xf32>
    %105 = arith.mulf %104, %104 : vector<8x32xf32>
    %cst_40 = arith.constant dense<0.000000e+00> : vector<8xf32>
    %106 = vector.multi_reduction <add>, %105, %cst_40 [1] : vector<8x32xf32> to vector<8xf32>
    %107 = vector.shape_cast %106 : vector<8xf32> to vector<8x1xf32>
    %108 = math.sqrt %107 : vector<8x1xf32>
    %cst_41 = arith.constant 9.99999974E-6 : f32
    %109 = vector.broadcast %cst_41 : f32 to vector<8x1xf32>
    %110 = arith.maximumf %108, %109 : vector<8x1xf32>
    %111 = tpu.reciprocal %110 {approx = true} : vector<8x1xf32> -> vector<8x1xf32>
    %112 = vector.broadcast %111 : vector<8x1xf32> to vector<8x32xf32>
    %113 = arith.mulf %104, %112 : vector<8x32xf32>
    %114 = arith.truncf %113 : vector<8x32xf32> to vector<8x32xbf16>
    %c1 = arith.constant 1 : index
    %c0_42 = arith.constant 0 : index
    %c0_43 = arith.constant 0 : index
    %115 = vector.load %arg2[%c1, %c0_42, %c0_43] : memref<2x32x96xbf16, #tpu.memory_space<vmem>>, vector<1x32x96xbf16>
    %116 = vector.shape_cast %115 : vector<1x32x96xbf16> to vector<32x96xbf16>
    %cst_44 = arith.constant dense<0.000000e+00> : vector<8x96xf32>
    %117 = tpu.matmul %114, %116, %cst_44 {dimension_numbers = #tpu.dot_dimension_numbers<[1], [0], [0], [1], [0, 0, 1, 1], [], []>} : vector<8x32xbf16>, vector<32x96xbf16>, vector<8x96xf32> -> vector<8x96xf32>
    %118 = vector.extract_strided_slice %117 {offsets = [0, 0], sizes = [8, 16], strides = [1, 1]} : vector<8x96xf32> to vector<8x16xf32>
    %119 = arith.truncf %118 : vector<8x16xf32> to vector<8x16xbf16>
    %120 = vector.extract_strided_slice %117 {offsets = [0, 32], sizes = [8, 16], strides = [1, 1]} : vector<8x96xf32> to vector<8x16xf32>
    %121 = arith.truncf %120 : vector<8x16xf32> to vector<8x16xbf16>
    %122 = vector.extract_strided_slice %117 {offsets = [0, 64], sizes = [8, 16], strides = [1, 1]} : vector<8x96xf32> to vector<8x16xf32>
    %123 = arith.truncf %122 : vector<8x16xf32> to vector<8x16xbf16>
    "tpu.trace_start"() <{level = 10 : i32, message = "td,sd->ts"}> : () -> ()
    %cst_45 = arith.constant dense<0.000000e+00> : vector<8x8xf32>
    %124 = tpu.matmul %119, %121, %cst_45 {dimension_numbers = #tpu.dot_dimension_numbers<[1], [1], [0], [0], [0, 0, 1, 0], [], []>} : vector<8x16xbf16>, vector<8x16xbf16>, vector<8x8xf32> -> vector<8x8xf32>
    "tpu.trace_stop"() : () -> ()
    %cst_46 = arith.constant 2.500000e-01 : f32
    %125 = vector.broadcast %cst_46 : f32 to vector<8x8xf32>
    %126 = arith.mulf %124, %125 : vector<8x8xf32>
    %cst_47 = arith.constant -1.000000e+30 : f32
    %127 = vector.broadcast %cst_47 : f32 to vector<8x8xf32>
    %128 = arith.select %4, %126, %127 : vector<8x8xi1>, vector<8x8xf32>
    %cst_48 = arith.constant dense<0xFF800000> : vector<8xf32>
    %129 = vector.multi_reduction <maximumf>, %128, %cst_48 [1] : vector<8x8xf32> to vector<8xf32>
    %130 = vector.shape_cast %129 : vector<8xf32> to vector<8x1xf32>
    %131 = vector.broadcast %130 : vector<8x1xf32> to vector<8x8xf32>
    %132 = arith.subf %128, %131 : vector<8x8xf32>
    %133 = math.exp %132 : vector<8x8xf32>
    %cst_49 = arith.constant dense<0.000000e+00> : vector<8xf32>
    %134 = vector.multi_reduction <add>, %133, %cst_49 [1] : vector<8x8xf32> to vector<8xf32>
    %135 = vector.shape_cast %134 : vector<8xf32> to vector<8x1xf32>
    %136 = tpu.reciprocal %135 {approx = true} : vector<8x1xf32> -> vector<8x1xf32>
    %137 = vector.broadcast %136 : vector<8x1xf32> to vector<8x8xf32>
    %138 = arith.mulf %133, %137 : vector<8x8xf32>
    %139 = arith.truncf %138 : vector<8x8xf32> to vector<8x8xbf16>
    %cst_50 = arith.constant dense<0.000000e+00> : vector<8x16xf32>
    %140 = tpu.matmul %139, %123, %cst_50 {dimension_numbers = #tpu.dot_dimension_numbers<[1], [0], [0], [1], [0, 0, 1, 1], [], []>} : vector<8x8xbf16>, vector<8x16xbf16>, vector<8x16xf32> -> vector<8x16xf32>
    %141 = arith.truncf %140 : vector<8x16xf32> to vector<8x16xbf16>
    %c1_51 = arith.constant 1 : index
    %c0_52 = arith.constant 0 : index
    %c0_53 = arith.constant 0 : index
    %142 = vector.load %arg3[%c1_51, %c0_52, %c0_53] : memref<2x32x32xbf16, #tpu.memory_space<vmem>>, vector<1x16x32xbf16>
    %143 = vector.shape_cast %142 : vector<1x16x32xbf16> to vector<16x32xbf16>
    %cst_54 = arith.constant dense<0.000000e+00> : vector<8x32xf32>
    %144 = tpu.matmul %141, %143, %cst_54 {dimension_numbers = #tpu.dot_dimension_numbers<[1], [0], [0], [1], [0, 0, 1, 1], [], []>} : vector<8x16xbf16>, vector<16x32xbf16>, vector<8x32xf32> -> vector<8x32xf32>
    %145 = vector.extract_strided_slice %117 {offsets = [0, 16], sizes = [8, 16], strides = [1, 1]} : vector<8x96xf32> to vector<8x16xf32>
    %146 = arith.truncf %145 : vector<8x16xf32> to vector<8x16xbf16>
    %147 = vector.extract_strided_slice %117 {offsets = [0, 48], sizes = [8, 16], strides = [1, 1]} : vector<8x96xf32> to vector<8x16xf32>
    %148 = arith.truncf %147 : vector<8x16xf32> to vector<8x16xbf16>
    %149 = vector.extract_strided_slice %117 {offsets = [0, 80], sizes = [8, 16], strides = [1, 1]} : vector<8x96xf32> to vector<8x16xf32>
    %150 = arith.truncf %149 : vector<8x16xf32> to vector<8x16xbf16>
    "tpu.trace_start"() <{level = 10 : i32, message = "td,sd->ts"}> : () -> ()
    %cst_55 = arith.constant dense<0.000000e+00> : vector<8x8xf32>
    %151 = tpu.matmul %146, %148, %cst_55 {dimension_numbers = #tpu.dot_dimension_numbers<[1], [1], [0], [0], [0, 0, 1, 0], [], []>} : vector<8x16xbf16>, vector<8x16xbf16>, vector<8x8xf32> -> vector<8x8xf32>
    "tpu.trace_stop"() : () -> ()
    %cst_56 = arith.constant 2.500000e-01 : f32
    %152 = vector.broadcast %cst_56 : f32 to vector<8x8xf32>
    %153 = arith.mulf %151, %152 : vector<8x8xf32>
    %cst_57 = arith.constant -1.000000e+30 : f32
    %154 = vector.broadcast %cst_57 : f32 to vector<8x8xf32>
    %155 = arith.select %4, %153, %154 : vector<8x8xi1>, vector<8x8xf32>
    %cst_58 = arith.constant dense<0xFF800000> : vector<8xf32>
    %156 = vector.multi_reduction <maximumf>, %155, %cst_58 [1] : vector<8x8xf32> to vector<8xf32>
    %157 = vector.shape_cast %156 : vector<8xf32> to vector<8x1xf32>
    %158 = vector.broadcast %157 : vector<8x1xf32> to vector<8x8xf32>
    %159 = arith.subf %155, %158 : vector<8x8xf32>
    %160 = math.exp %159 : vector<8x8xf32>
    %cst_59 = arith.constant dense<0.000000e+00> : vector<8xf32>
    %161 = vector.multi_reduction <add>, %160, %cst_59 [1] : vector<8x8xf32> to vector<8xf32>
    %162 = vector.shape_cast %161 : vector<8xf32> to vector<8x1xf32>
    %163 = tpu.reciprocal %162 {approx = true} : vector<8x1xf32> -> vector<8x1xf32>
    %164 = vector.broadcast %163 : vector<8x1xf32> to vector<8x8xf32>
    %165 = arith.mulf %160, %164 : vector<8x8xf32>
    %166 = arith.truncf %165 : vector<8x8xf32> to vector<8x8xbf16>
    %cst_60 = arith.constant dense<0.000000e+00> : vector<8x16xf32>
    %167 = tpu.matmul %166, %150, %cst_60 {dimension_numbers = #tpu.dot_dimension_numbers<[1], [0], [0], [1], [0, 0, 1, 1], [], []>} : vector<8x8xbf16>, vector<8x16xbf16>, vector<8x16xf32> -> vector<8x16xf32>
    %168 = arith.truncf %167 : vector<8x16xf32> to vector<8x16xbf16>
    %c1_61 = arith.constant 1 : index
    %c16_62 = arith.constant 16 : index
    %c0_63 = arith.constant 0 : index
    %169 = vector.load %arg3[%c1_61, %c16_62, %c0_63] : memref<2x32x32xbf16, #tpu.memory_space<vmem>>, vector<1x16x32xbf16>
    %170 = vector.shape_cast %169 : vector<1x16x32xbf16> to vector<16x32xbf16>
    %cst_64 = arith.constant dense<0.000000e+00> : vector<8x32xf32>
    %171 = tpu.matmul %168, %170, %cst_64 {dimension_numbers = #tpu.dot_dimension_numbers<[1], [0], [0], [1], [0, 0, 1, 1], [], []>} : vector<8x16xbf16>, vector<16x32xbf16>, vector<8x32xf32> -> vector<8x32xf32>
    %172 = arith.addf %144, %171 : vector<8x32xf32>
    %173 = arith.addf %104, %172 : vector<8x32xf32>
    %174 = arith.mulf %173, %173 : vector<8x32xf32>
    %cst_65 = arith.constant dense<0.000000e+00> : vector<8xf32>
    %175 = vector.multi_reduction <add>, %174, %cst_65 [1] : vector<8x32xf32> to vector<8xf32>
    %176 = vector.shape_cast %175 : vector<8xf32> to vector<8x1xf32>
    %177 = math.sqrt %176 : vector<8x1xf32>
    %cst_66 = arith.constant 9.99999974E-6 : f32
    %178 = vector.broadcast %cst_66 : f32 to vector<8x1xf32>
    %179 = arith.maximumf %177, %178 : vector<8x1xf32>
    %180 = tpu.reciprocal %179 {approx = true} : vector<8x1xf32> -> vector<8x1xf32>
    %181 = vector.broadcast %180 : vector<8x1xf32> to vector<8x32xf32>
    %182 = arith.mulf %173, %181 : vector<8x32xf32>
    %183 = arith.truncf %182 : vector<8x32xf32> to vector<8x32xbf16>
    %c1_67 = arith.constant 1 : index
    %c0_68 = arith.constant 0 : index
    %c0_69 = arith.constant 0 : index
    %184 = vector.load %arg4[%c1_67, %c0_68, %c0_69] : memref<2x32x128xbf16, #tpu.memory_space<vmem>>, vector<1x32x128xbf16>
    %185 = vector.shape_cast %184 : vector<1x32x128xbf16> to vector<32x128xbf16>
    %cst_70 = arith.constant dense<0.000000e+00> : vector<8x128xf32>
    %186 = tpu.matmul %183, %185, %cst_70 {dimension_numbers = #tpu.dot_dimension_numbers<[1], [0], [0], [1], [0, 0, 1, 1], [], []>} : vector<8x32xbf16>, vector<32x128xbf16>, vector<8x128xf32> -> vector<8x128xf32>
    %187 = arith.mulf %186, %186 : vector<8x128xf32>
    %188 = arith.mulf %186, %187 : vector<8x128xf32>
    %cst_71 = arith.constant 4.471500e-02 : f32
    %189 = vector.broadcast %cst_71 : f32 to vector<8x128xf32>
    %190 = arith.mulf %189, %188 : vector<8x128xf32>
    %191 = arith.addf %186, %190 : vector<8x128xf32>
    %cst_72 = arith.constant 0.797884583 : f32
    %192 = vector.broadcast %cst_72 : f32 to vector<8x128xf32>
    %193 = arith.mulf %192, %191 : vector<8x128xf32>
    %194 = math.tanh %193 : vector<8x128xf32>
    %cst_73 = arith.constant 1.000000e+00 : f32
    %195 = vector.broadcast %cst_73 : f32 to vector<8x128xf32>
    %196 = arith.addf %195, %194 : vector<8x128xf32>
    %cst_74 = arith.constant 5.000000e-01 : f32
    %197 = vector.broadcast %cst_74 : f32 to vector<8x128xf32>
    %198 = arith.mulf %197, %196 : vector<8x128xf32>
    %199 = arith.mulf %186, %198 : vector<8x128xf32>
    %200 = arith.truncf %199 : vector<8x128xf32> to vector<8x128xbf16>
    %c1_75 = arith.constant 1 : index
    %c0_76 = arith.constant 0 : index
    %c0_77 = arith.constant 0 : index
    %201 = vector.load %arg5[%c1_75, %c0_76, %c0_77] : memref<2x128x32xbf16, #tpu.memory_space<vmem>>, vector<1x128x32xbf16>
    %202 = vector.shape_cast %201 : vector<1x128x32xbf16> to vector<128x32xbf16>
    %cst_78 = arith.constant dense<0.000000e+00> : vector<8x32xf32>
    %203 = tpu.matmul %200, %202, %cst_78 {dimension_numbers = #tpu.dot_dimension_numbers<[1], [0], [0], [1], [0, 0, 1, 1], [], []>} : vector<8x128xbf16>, vector<128x32xbf16>, vector<8x32xf32> -> vector<8x32xf32>
    %204 = arith.addf %173, %203 : vector<8x32xf32>
    %205 = vector.extract_strided_slice %204 {offsets = [7, 0], sizes = [1, 32], strides = [1, 1]} : vector<8x32xf32> to vector<1x32xf32>
    %206 = arith.mulf %205, %205 : vector<1x32xf32>
    %cst_79 = arith.constant dense<0.000000e+00> : vector<1xf32>
    %207 = vector.multi_reduction <add>, %206, %cst_79 [1] : vector<1x32xf32> to vector<1xf32>
    %208 = vector.shape_cast %207 : vector<1xf32> to vector<1x1xf32>
    %209 = math.sqrt %208 : vector<1x1xf32>
    %cst_80 = arith.constant 9.99999974E-6 : f32
    %210 = vector.broadcast %cst_80 : f32 to vector<1x1xf32>
    %211 = arith.maximumf %209, %210 : vector<1x1xf32>
    %212 = tpu.reciprocal %211 {approx = true} : vector<1x1xf32> -> vector<1x1xf32>
    %213 = vector.broadcast %212 : vector<1x1xf32> to vector<1x32xf32>
    %214 = arith.mulf %205, %213 : vector<1x32xf32>
    %215 = arith.truncf %214 : vector<1x32xf32> to vector<1x32xbf16>
    %c0_81 = arith.constant 0 : index
    %c0_82 = arith.constant 0 : index
    %216 = vector.load %arg6[%c0_81, %c0_82] : memref<32x128xbf16, #tpu.memory_space<vmem>>, vector<32x128xbf16>
    %cst_83 = arith.constant dense<0.000000e+00> : vector<1x128xf32>
    %217 = tpu.matmul %215, %216, %cst_83 {dimension_numbers = #tpu.dot_dimension_numbers<[1], [0], [0], [1], [0, 0, 1, 1], [], []>} : vector<1x32xbf16>, vector<32x128xbf16>, vector<1x128xf32> -> vector<1x128xf32>
    %c0_84 = arith.constant 0 : index
    %c0_85 = arith.constant 0 : index
    %c0_86 = arith.constant 0 : index
    %218 = vector.load %arg7[%c0_84, %c0_85, %c0_86] : memref<1x1x128xf32, #tpu.memory_space<vmem>>, vector<1x1x128xf32>
    %219 = vector.shape_cast %218 : vector<1x1x128xf32> to vector<1x128xf32>
    %220 = vector.shape_cast %217 : vector<1x128xf32> to vector<1x1x128xf32>
    tpu.vector_store %arg7[%c0_84, %c0_85, %c0_86], %220 {strides = array<i32>} : memref<1x1x128xf32, #tpu.memory_space<vmem>>, vector<1x1x128xf32>,
    return
  }
  func.func @transform_0(%arg0: i32) -> (i32, i32, i32) {
    %c0_i32 = arith.constant 0 : i32
    %c0_i32_0 = arith.constant 0 : i32
    %c0_i32_1 = arith.constant 0 : i32
    return %arg0, %c0_i32, %c0_i32_0 : i32, i32, i32
  }
  func.func @transform_1(%arg0: i32) -> (i32, i32, i32) {
    %c0_i32 = arith.constant 0 : i32
    %c0_i32_0 = arith.constant 0 : i32
    %c0_i32_1 = arith.constant 0 : i32
    %c0_i32_2 = arith.constant 0 : i32
    return %c0_i32, %c0_i32_0, %c0_i32_1 : i32, i32, i32
  }
  func.func @transform_2(%arg0: i32) -> (i32, i32, i32) {
    %c0_i32 = arith.constant 0 : i32
    %c0_i32_0 = arith.constant 0 : i32
    %c0_i32_1 = arith.constant 0 : i32
    %c0_i32_2 = arith.constant 0 : i32
    return %c0_i32, %c0_i32_0, %c0_i32_1 : i32, i32, i32
  }
  func.func @transform_3(%arg0: i32) -> (i32, i32, i32) {
    %c0_i32 = arith.constant 0 : i32
    %c0_i32_0 = arith.constant 0 : i32
    %c0_i32_1 = arith.constant 0 : i32
    %c0_i32_2 = arith.constant 0 : i32
    return %c0_i32, %c0_i32_0, %c0_i32_1 : i32, i32, i32
  }
  func.func @transform_4(%arg0: i32) -> (i32, i32, i32) {
    %c0_i32 = arith.constant 0 : i32
    %c0_i32_0 = arith.constant 0 : i32
    %c0_i32_1 = arith.constant 0 : i32
    %c0_i32_2 = arith.constant 0 : i32
    return %c0_i32, %c0_i32_0, %c0_i32_1 : i32, i32, i32
  }
  func.func @transform_5(%arg0: i32) -> (i32, i32) {
    %c0_i32 = arith.constant 0 : i32
    %c0_i32_0 = arith.constant 0 : i32
    %c0_i32_1 = arith.constant 0 : i32
    return %c0_i32, %c0_i32_0 : i32, i32
  }
  func.func @transform_6(%arg0: i32) -> (i32, i32, i32) {
    %c0_i32 = arith.constant 0 : i32
    %c0_i32_0 = arith.constant 0 : i32
    %c0_i32_1 = arith.constant 0 : i32
    return %arg0, %c0_i32, %c0_i32_0 : i32, i32, i32
  }
}

</mosaic_0001>

<bundles_post_ra>
// kernel: gazella_forward.1
= control target key start
LH: loop header
LB: loop body
LE: loop exit
PB: predicated region body
PF: predicated region fallthrough
CT: control target
= control target key end

     0   :  { %11 = vsyncpa [#allocation3], 0  ;;  %s1747_s0 = inlined_call_operand.vmem [shape: f32[2,8,32], index: 0, kind: input, shape index: {}]   ;;  %s1748_s1 = inlined_call_operand.vmem [shape: bf16[2,32,96], index: 1, kind: input, shape index: {}]   ;;  %s1749_s2 = inlined_call_operand.vmem [shape: bf16[2,32,32], index: 2, kind: input, shape index: {}]   ;;  %s1750_s3 = inlined_call_operand.vmem [shape: bf16[2,32,128], index: 3, kind: input, shape index: {}]   ;;  %s1751_s4 = inlined_call_operand.vmem [shape: bf16[2,128,32], index: 4, kind: input, shape index: {}]   ;;  %s1752_s5 = inlined_call_operand.vmem [shape: bf16[32,128], index: 5, kind: input, shape index: {}]   ;;  %s1753_s6 = inlined_call_operand.hbm [shape: f32[2,1,128], index: 6, kind: output, shape index: {}]  }
   0x1   :  { %13 = vsyncpa [#allocation3 + $0x1], 0  ;;  %s1495_s21 = smov 0   ;;  %s1497_s22 = smov 0  }
   0x2   :  { %s1499_s23 = smov 0   ;;  %s1501_s24 = smov 0  }
   0x3 LB: > { %s1516_s25 = sadd.s32 4294967295, %s1453_s24   ;;  %s1105_s26 = sadd.s32 4294967294, %s1453_s24   ;;  %s1453_s24 = sphi %s1501_s24, %s1759_s24   ;;  %s1449_s23 = sphi %s1499_s23, %s1758_s23   ;;  %s1445_s22 = sphi %s1497_s22, %s1757_s22   ;;  %s1441_s21 = sphi %s1495_s21, %s1756_s21  }
   0x4   : > { %s1520_s27 = sadd.s32 1, %s1453_s24   ;;  %s157_s28 = sadd.s32 1, %s1449_s23 }
   0x5   : > { %s154_s29 = ssub.s32 %s1453_s24, %s1520_s27  ;;  %p167_p0 = scmp.ne.s32.totalorder %s1449_s23, %s1445_s22 }
   0x6   : > { %p155_p1 = scmp.eq.s32.totalorder %s154_s29, 0  ;;  %p168_p2 = scmp.eq.s32.totalorder %s1516_s25, 1 }
   0x7   : > { %p173_p3 = scmp.ne.s32.totalorder %s1445_s22, %s1441_s21  ;;  %p174_p4 = scmp.eq.s32.totalorder %s1105_s26, 1 }
   0x8   : > { %s1531_s30 = scalar_select %p155_p1, %s1449_s23, %s157_s28  }
   0x9   : > { %p1533_p5 = por %p168_p2, %p167_p0  ;;  %p1537_p6 = por %p174_p4, %p173_p3 }
   0xa   : > { %p1108_p7 = scmp.ge.s32.totalorder %s1453_s24, 1  ;;  %p214_p8 = scmp.lt.s32.totalorder %s1453_s24, 3 }
   0xc   : > { %p215_p9 = pnand %p1108_p7, %p214_p8 }
   0xd   : > { %p242_p10 = scmp.lt.s32.totalorder (!%p215_p9), %s1516_s25, 1  ;;  %s1455_s18 = smov (!%p215_p9), 80  }
   0xe   : > { %218 = sbr.rel (%p215_p9) target bundleno = 3331 (0xd03), region = 44  ;;  %s1456_s19 = smov (!%p215_p9), 96  }
   0xf   : > { %s1457_s20 = smov (!%p215_p9), 112   ;;  %s1458_s26 = smov (!%p215_p9), 64  }
  0x10   : > { %s1459_s28 = smov (!%p215_p9), 48   ;;  %s240_s14 = sand.u32 (!%p215_p9), 1, %s1445_s22  }
  0x11   : > { %s1038_s16 = scalar_lea.sflag (!%p215_p9), [#allocation3], %s240_s14  ;;  %s1411_s11 = scalar_lea.hbm (!%p215_p9), %s1753_s6, 2 }
  0x13   : > { %s243_s9 = scalar_select %p242_p10, %s1516_s25, 1  ;;  %vm254_vm0 = vcmask 261120   ;;  %v1278_v3 = vld [vmem:[%s1748_s1 + $0x8] sm:$0xff]  ;;  %v1277_v4 = vld [vmem:[%s1748_s1] sm:$0xff]  ;;  %vm310_vm3 = vcmask 130048   ;;  %v248_v28 = vlaneseq  ;;  %vm332_vm5 = vcmask 64512  }
  0x14   : > { %299 = vmatpush.bf16.msra.mxu0 %v1278_v3  ;;  %vm350_vm6 = vcmask 1043456   ;;  %v1279_v63 = vld [vmem:[%s1749_s2] sm:$0xff]  ;;  %vm980_vm13 = vcmask 261127  }
  0x15   : > { %s1109_s10 = sshll.u32 %s243_s9, 3  ;;  %v1568_v29 = vshrl.u32 %v248_v28, 7  ;;  %v1570_v30 = vand.u32 127, %v248_v28 }
  0x16   : > { %s245_s13 = scalar_lea.vmem %s1747_s0, %s1109_s10 }
  0x17   : > { %v1548_v0 = vld [vmem:[%s245_s13] sm:$0xff]  ;;  %vm252_vm4 = vcmp.le.s32.totalorder %v1570_v30, %v1568_v29 }
  0x18   : > { %v253_v1 = vmul.f32 %v1548_v0, %v1548_v0  ;;  %300 = vmatpush.bf16.msra.mxu0 %v1277_v4 }
  0x1a   : > { %v255_v2 = vsel %vm254_vm0, %v253_v1, 0.0  ;;  %v1280_v1 = vld [vmem:[%s1749_s2 + $0x8] sm:$0xff] }
  0x1b   : > { %256 = vadd.xlane.f32.xlu0 %v255_v2 }
  0x1c   : > { %447 = vmatpush.bf16.msrb.mxu0 %v1280_v1 }
  0x8e   : > { %v257_v5 = vpop.xlane.xlu0 %256 }
  0x8f   : > { %1351 = vrsqrt.f32 %v257_v5  ;;  %vm265_vm1 = vcmp.eq.f32.partialorder %v257_v5, inf  ;;  %v268_v13 = vand.u32 2147483648, %v257_v5  ;;  %vm267_vm2 = vcmp.eq.f32.partialorder %v257_v5, 0.0 }
  0x95   : > { %v1352_v6 = vpop.eup %1351 }
  0x96   : > { %v259_v7 = vmul.f32 %v1352_v6, %v257_v5 }
  0x98   : > { %v260_v8 = vmul.f32 %v1352_v6, %v259_v7 }
  0x9a   : > { %v261_v9 = vmul.f32 0.5, %v260_v8 }
  0x9c   : > { %v262_v10 = vsub.f32 1.5, %v261_v9 }
  0x9e   : > { %v263_v11 = vmul.f32 %v1352_v6, %v262_v10 }
  0xa0   : > { %v264_v12 = vmul.f32 %v263_v11, %v257_v5 }
  0xa2   : > { %v266_v14 = vsel %vm265_vm1, %v257_v5, %v264_v12 }
  0xa3   : > { %v269_v15 = vsel %vm267_vm2, %v268_v13, %v266_v14 }
  0xa4   : > { %v270_v16 = vmax.f32 %v269_v15, 1e-05 }
  0xa6   : > { %1353 = vrcp.f32 %v270_v16  ;;  %v1282_v16 = vld [vmem:[%s1750_s3 + $0x8] sm:$0xff] }
  0xac   : > { %v1354_v17 = vpop.eup %1353 }
  0xad   : > { %v272_v18 = vmul.f32 %v1354_v17, %v1548_v0  ;;  %v1281_v17 = vld [vmem:[%s1750_s3] sm:$0xff] }
  0xaf   : > { %v273_v19 = vpack.c.bf16 %v272_v18, %v272_v18 }
  0xb1   : > { %1118 = vmatmul.msk.bf16.vlgmr.msra.gmra.mxu0 %vm254_vm0, %v273_v19  ;;  %v1289_v19 = vld [vmem:[%s1751_s4 + $0x30] sm:$0xff] }
 0x12e   : > { %v302_v20 = vpop.f32.mrf.mxu0 }
 0x12f   : > { %v306_v21 = vpack.c.bf16 %v302_v20, %v302_v20 }
 0x131   : > { %372 = vrot.lane.b32.xlu1 %v306_v21, %s1455_s18  ;;  %308 = vrot.lane.b32.xlu0 %v306_v21, %s1456_s19 }
 0x136   : > { %v304_v22 = vpop.f32.mrf.mxu0 }
 0x139   : > { %370 = vrot.lane.b32.xlu1 %v306_v21, %s1457_s20 }
 0x1a3   : > { %v373_v23 = vpop.permute.xlu1 %372  ;;  %v309_v24 = vpop.permute.xlu0 %308 }
 0x1a4   : > { %v315_v25 = vsel %vm310_vm3, %v309_v24, 0  ;;  %v378_v26 = vsel %vm310_vm3, %v373_v23, 0 }
 0x1a5   : > { %324 = vmatpush.bf16.xpose.msra.mxu1 %v315_v25  ;;  %387 = vmatpush.bf16.xpose.msra.mxu3 %v378_v26 }
 0x1ab   : > { %v371_v27 = vpop.permute.xlu1 %370 }
 0x1ac   : > { %1119 = vmatmul.msk.bf16.vlgmr.msra.gmra.mxu1 %vm310_vm3, %v306_v21  ;;  %1121 = vmatmul.msk.bf16.vlgmr.msra.gmra.mxu3 %vm310_vm3, %v371_v27 }
 0x1ad   : > { %521 = vmatpush.bf16.msrb.mxu3 %v1282_v16 }
 0x1b1   : > { %522 = vmatpush.bf16.msrb.mxu3 %v1281_v17 }
 0x229   : > { %v326_v31 = vpop.f32.mrf.mxu1 }
 0x22a   : > { %v330_v32 = vmul.f32 0.25, %v326_v31 }
 0x22c   : > { %v331_v33 = vsel %vm252_vm4, %v330_v32, -1e+30 }
 0x22d   : > { %v333_v34 = vsel %vm332_vm5, %v331_v33, -inf }
 0x22e   : > { %334 = vmax.xlane.f32.xlu2 %v333_v34 }
 0x22f   : > { %v389_v35 = vpop.f32.mrf.mxu3 }
 0x230   : > { %v393_v36 = vmul.f32 0.25, %v389_v35 }
 0x231   : > { %v328_v37 = vpop.f32.mrf.mxu1 }
 0x232   : > { %v394_v38 = vsel %vm252_vm4, %v393_v36, -1e+30  ;;  %v1288_v36 = vld [vmem:[%s1751_s4 + $0x28] sm:$0xff]  ;;  %v1287_v37 = vld [vmem:[%s1751_s4 + $0x20] sm:$0xff] }
 0x233   : > { %v395_v39 = vsel %vm332_vm5, %v394_v38, -inf }
 0x236   : > { %396 = vmax.xlane.f32.xlu2 %v395_v39  ;;  %v1285_v39 = vld [vmem:[%s1751_s4 + $0x10] sm:$0xff] }
 0x237   : > { %v391_v40 = vpop.f32.mrf.mxu3 }
 0x238   : > { %v1284_v40 = vld [vmem:[%s1751_s4 + $0x8] sm:$0xff] }
 0x24e   : > { %345 = vrot.lane.b32.xlu2 %v306_v21, %s1458_s26 }
 0x256   : > { %407 = vrot.lane.b32.xlu2 %v306_v21, %s1459_s28 }
 0x2a1   : > { %v335_v41 = vpop.xlane.xlu2 %334 }
 0x2a2   : > { %v336_v42 = vsub.f32 %v331_v33, %v335_v41  ;;  %v1283_v41 = vld [vmem:[%s1751_s4] sm:$0xff] }
 0x2a4   : > { %v337_v43 = vmul.f32 1.442695, %v336_v42 }
 0x2a6   : > { %1355 = vpow2.f32 %v337_v43 }
 0x2a9   : > { %v397_v44 = vpop.xlane.xlu2 %396 }
 0x2aa   : > { %v398_v45 = vsub.f32 %v394_v38, %v397_v44  ;;  %v1286_v38 = vld [vmem:[%s1751_s4 + $0x18] sm:$0xff] }
 0x2ac   : > { %v1356_v46 = vpop.eup %1355  ;;  %v399_v47 = vmul.f32 1.442695, %v398_v45 }
 0x2ad   : > { %v339_v48 = vsel %vm332_vm5, %v1356_v46, 0.0 }
 0x2ae   : > { %1357 = vpow2.f32 %v399_v47  ;;  %340 = vadd.xlane.f32.xlu1 %v339_v48 }
 0x2b1   : > { %v346_v49 = vpop.permute.xlu2 %345 }
 0x2b2   : > { %v352_v50 = vsel %vm350_vm6, %v346_v49, 0 }
 0x2b3   : > { %361 = vmatpush.bf16.msra.mxu2 %v352_v50 }
 0x2b4   : > { %v1358_v51 = vpop.eup %1357 }
 0x2b5   : > { %v401_v52 = vsel %vm332_vm5, %v1358_v51, 0.0 }
 0x2b6   : > { %402 = vadd.xlane.f32.xlu0 %v401_v52 }
 0x2b9   : > { %v408_v53 = vpop.permute.xlu2 %407 }
 0x2ba   : > { %v413_v54 = vsel %vm350_vm6, %v408_v53, 0 }
 0x2bb   : > { %422 = vmatpush.bf16.msrb.mxu2 %v413_v54 }
 0x321   : > { %v341_v55 = vpop.xlane.xlu1 %340 }
 0x322   : > { %1359 = vrcp.f32 %v341_v55 }
 0x328   : > { %v1360_v56 = vpop.eup %1359 }
 0x329   : > { %v343_v57 = vmul.f32 %v1360_v56, %v1356_v46  ;;  %v403_v58 = vpop.xlane.xlu0 %402 }
 0x32a   : > { %1361 = vrcp.f32 %v403_v58 }
 0x32b   : > { %v344_v59 = vpack.c.bf16 %v343_v57, %v343_v57 }
 0x32d   : > { %1120 = vmatmul.msk.bf16.vlgmr.msra.gmra.mxu2 %vm332_vm5, %v344_v59  ;;  %v1292_v59 = vld [vmem:[%s1748_s1 + $0x18] sm:$0xff] }
 0x32e   : > { %469 = vmatpush.bf16.msra.mxu2 %v1279_v63  ;;  %662 = vmatpush.bf16.msra.mxu0 %v1292_v59 }
 0x330   : > { %v1362_v60 = vpop.eup %1361 }
 0x331   : > { %v405_v61 = vmul.f32 %v1362_v60, %v1358_v51  ;;  %v1291_v60 = vld [vmem:[%s1748_s1 + $0x10] sm:$0xff] }
 0x332   : > { %663 = vmatpush.bf16.msra.mxu0 %v1291_v60 }
 0x333   : > { %v406_v62 = vpack.c.bf16 %v405_v61, %v405_v61 }
 0x33d   : > { %1122 = vmatmul.msk.bf16.vlgmr.msrb.gmra.mxu2 %vm332_vm5, %v406_v62 }
 0x3b0   : > { %v363_v2 = vpop.f32.mrf.mxu2 }
 0x3b1   : > { %v367_v3 = vpack.c.bf16 %v363_v2, %v363_v2 }
 0x3b3   : > { %1132 = vmatmul.msk.bf16.vlgmr.msra.gmra.mxu2 %vm310_vm3, %v367_v3 }
 0x3b8   : > { %v365_v4 = vpop.f32.mrf.mxu2 }
 0x3c0   : > { %v424_v5 = vpop.f32.mrf.mxu2 }
 0x3c1   : > { %v428_v6 = vpack.c.bf16 %v424_v5, %v424_v5 }
 0x3c3   : > { %1127 = vmatmul.msk.bf16.vlgmr.msrb.gmra.mxu0 %vm310_vm3, %v428_v6 }
 0x3c8   : > { %v426_v7 = vpop.f32.mrf.mxu2 }
 0x436   : > { %v471_v8 = vpop.f32.mrf.mxu2 }
 0x43e   : > { %v473_v9 = vpop.f32.mrf.mxu2 }
 0x440   : > { %v449_v10 = vpop.f32.mrf.mxu0 }
 0x441   : > { %v472_v11 = vadd.f32 %v471_v8, %v449_v10 }
 0x443   : > { %v475_v12 = vadd.f32 %v472_v11, %v1548_v0  ;;  %v1290_v0 = vld [vmem:[%s1751_s4 + $0x38] sm:$0xff] }
 0x444   : > { %602 = vmatpush.bf16.msrb.mxu2 %v1290_v0 }
 0x445   : > { %v476_v13 = vmul.f32 %v475_v12, %v475_v12 }
 0x447   : > { %v477_v14 = vsel %vm254_vm0, %v476_v13, 0.0 }
 0x448   : > { %478 = vadd.xlane.f32.xlu2 %v477_v14  ;;  %v451_v15 = vpop.f32.mrf.mxu0  ;;  %603 = vmatpush.bf16.msrb.mxu2 %v1289_v19 }
 0x44c   : > { %604 = vmatpush.bf16.msrb.mxu2 %v1288_v36 }
 0x450   : > { %605 = vmatpush.bf16.msrb.mxu2 %v1287_v37 }
 0x454   : > { %606 = vmatpush.bf16.msrb.mxu2 %v1286_v38 }
 0x458   : > { %607 = vmatpush.bf16.msrb.mxu2 %v1285_v39 }
 0x45c   : > { %608 = vmatpush.bf16.msrb.mxu2 %v1284_v40 }
 0x460   : > { %609 = vmatpush.bf16.msrb.mxu2 %v1283_v41 }
 0x4bb   : > { %v479_v18 = vpop.xlane.xlu2 %478 }
 0x4bc   : > { %1363 = vrsqrt.f32 %v479_v18  ;;  %vm487_vm7 = vcmp.eq.f32.partialorder %v479_v18, inf  ;;  %v490_v27 = vand.u32 2147483648, %v479_v18  ;;  %vm489_vm8 = vcmp.eq.f32.partialorder %v479_v18, 0.0 }
 0x4c2   : > { %v1364_v20 = vpop.eup %1363 }
 0x4c3   : > { %v481_v21 = vmul.f32 %v1364_v20, %v479_v18 }
 0x4c5   : > { %v482_v22 = vmul.f32 %v1364_v20, %v481_v21 }
 0x4c7   : > { %v483_v23 = vmul.f32 0.5, %v482_v22 }
 0x4c9   : > { %v484_v24 = vsub.f32 1.5, %v483_v23 }
 0x4cb   : > { %v485_v25 = vmul.f32 %v1364_v20, %v484_v24 }
 0x4cd   : > { %v486_v26 = vmul.f32 %v485_v25, %v479_v18 }
 0x4cf   : > { %v488_v28 = vsel %vm487_vm7, %v479_v18, %v486_v26 }
 0x4d0   : > { %v491_v31 = vsel %vm489_vm8, %v490_v27, %v488_v28 }
 0x4d1   : > { %v492_v32 = vmax.f32 %v491_v31, 1e-05 }
 0x4d3   : > { %1365 = vrcp.f32 %v492_v32 }
 0x4d9   : > { %v1366_v33 = vpop.eup %1365 }
 0x4da   : > { %v494_v34 = vmul.f32 %v1366_v33, %v475_v12 }
 0x4dc   : > { %v495_v35 = vpack.c.bf16 %v494_v34, %v494_v34 }
 0x4de   : > { %1141 = vmatmul.msk.bf16.vlgmr.msrb.gmra.mxu3 %vm254_vm0, %v495_v35 }
 0x561   : > { %v524_v42 = vpop.f32.mrf.mxu3 }
 0x562   : > { %v528_v43 = vmul.f32 %v524_v42, %v524_v42 }
 0x564   : > { %v529_v44 = vmul.f32 %v528_v43, %v524_v42 }
 0x566   : > { %v530_v45 = vmul.f32 0.044715, %v529_v44 }
 0x568   : > { %v531_v46 = vadd.f32 %v530_v45, %v524_v42 }
 0x569   : > { %v526_v47 = vpop.f32.mrf.mxu3 }
 0x56a   : > { %v532_v48 = vmul.f32 0.7978846, %v531_v46 }
 0x56c   : > { %1367 = vtanh.f32 %v532_v48 }
 0x572   : > { %v1368_v49 = vpop.eup %1367 }
 0x573   : > { %v534_v50 = vadd.f32 1.0, %v1368_v49 }
 0x575   : > { %v535_v51 = vmul.f32 0.5, %v534_v50 }
 0x577   : > { %v536_v52 = vmul.f32 %v535_v51, %v524_v42 }
 0x579   : > { %v537_v53 = vpack.c.bf16 %v536_v52, %v536_v52  ;;  %v1293_v52 = vld [vmem:[%s1749_s2 + $0x10] sm:$0xff] }
 0x57a   : > { %830 = vmatpush.bf16.msra.mxu2 %v1293_v52 }
 0x57b   : > { %610 = vmatmul.bf16.vlgmr.msrb.gmra.mxu2 %v537_v53  ;;  %v1294_v53 = vld [vmem:[%s1749_s2 + $0x18] sm:$0xff] }
 0x5fe   : > { %v611_v54 = vpop.f32.mrf.mxu2 }
 0x5ff   : > { %v1631_v55 = vadd.f32 %v611_v54, %v475_v12 }
 0x601   : > { %v616_v56 = vmul.f32 %v1631_v55, %v1631_v55 }
 0x603   : > { %v617_v57 = vsel %vm254_vm0, %v616_v56, 0.0 }
 0x604   : > { %618 = vadd.xlane.f32.xlu1 %v617_v57 }
 0x606   : > { %v613_v58 = vpop.f32.mrf.mxu2 }
 0x677   : > { %v619_v61 = vpop.xlane.xlu1 %618 }
 0x678   : > { %1369 = vrsqrt.f32 %v619_v61  ;;  %vm627_vm9 = vcmp.eq.f32.partialorder %v619_v61, inf  ;;  %v630_v6 = vand.u32 2147483648, %v619_v61  ;;  %vm629_vm10 = vcmp.eq.f32.partialorder %v619_v61, 0.0 }
 0x67e   : > { %v1370_v62 = vpop.eup %1369 }
 0x67f   : > { %v621_v63 = vmul.f32 %v1370_v62, %v619_v61 }
 0x681   : > { %v622_v1 = vmul.f32 %v1370_v62, %v621_v63 }
 0x683   : > { %v623_v2 = vmul.f32 0.5, %v622_v1 }
 0x685   : > { %v624_v3 = vsub.f32 1.5, %v623_v2 }
 0x687   : > { %v625_v4 = vmul.f32 %v1370_v62, %v624_v3 }
 0x689   : > { %v626_v5 = vmul.f32 %v625_v4, %v619_v61 }
 0x68b   : > { %v628_v7 = vsel %vm627_vm9, %v619_v61, %v626_v5 }
 0x68c   : > { %v631_v8 = vsel %vm629_vm10, %v630_v6, %v628_v7  ;;  %v1296_v6 = vld [vmem:[%s1750_s3 + $0x18] sm:$0xff]  ;;  %v1295_v7 = vld [vmem:[%s1750_s3 + $0x10] sm:$0xff] }
 0x68d   : > { %v632_v9 = vmax.f32 %v631_v8, 1e-05 }
 0x68f   : > { %1371 = vrcp.f32 %v632_v9  ;;  %v1303_v9 = vld [vmem:[%s1751_s4 + $0x70] sm:$0xff] }
 0x695   : > { %v1372_v10 = vpop.eup %1371 }
 0x696   : > { %v634_v11 = vmul.f32 %v1372_v10, %v1631_v55 }
 0x698   : > { %v635_v12 = vpack.c.bf16 %v634_v11, %v634_v11 }
 0x69a   : > { %1186 = vmatmul.msk.bf16.vlgmr.msra.gmra.mxu0 %vm254_vm0, %v635_v12 }
 0x717   : > { %v665_v13 = vpop.f32.mrf.mxu0 }
 0x718   : > { %v669_v14 = vpack.c.bf16 %v665_v13, %v665_v13 }
 0x71a   : > { %731 = vrot.lane.b32.xlu2 %v669_v14, %s1457_s20  ;;  %733 = vrot.lane.b32.xlu0 %v669_v14, %s1455_s18  ;;  %s241_s20 = scalar_lea.vmem [#allocation2], %s240_s14 }
 0x71b   : > { %671 = vrot.lane.b32.xlu1 %v669_v14, %s1456_s19  ;;  %s1046_s19 = scalar_lea.hbm %s1753_s6, %s1516_s25 }
 0x71f   : > { %v667_v15 = vpop.f32.mrf.mxu0 }
 0x774   : > { %v732_v19 = vpop.permute.xlu2 %731 }
 0x78c   : > { %v734_v16 = vpop.permute.xlu0 %733 }
 0x78d   : > { %v739_v17 = vsel %vm310_vm3, %v734_v16, 0  ;;  %v672_v18 = vpop.permute.xlu1 %671 }
 0x78e   : > { %v677_v0 = vsel %vm310_vm3, %v672_v18, 0  ;;  %748 = vmatpush.bf16.xpose.msrb.mxu0 %v739_v17 }
 0x78f   : > { %686 = vmatpush.bf16.xpose.msrb.mxu1 %v677_v0 }
 0x795   : > { %1191 = vmatmul.msk.bf16.vlgmr.msrb.gmra.mxu0 %vm310_vm3, %v732_v19 }
 0x796   : > { %1187 = vmatmul.msk.bf16.vlgmr.msrb.gmra.mxu1 %vm310_vm3, %v669_v14  ;;  %883 = vmatpush.bf16.msra.mxu0 %v1296_v6 }
 0x79a   : > { %884 = vmatpush.bf16.msra.mxu0 %v1295_v7 }
 0x812   : > { %v750_v20 = vpop.f32.mrf.mxu0 }
 0x813   : > { %v688_v21 = vpop.f32.mrf.mxu1  ;;  %v754_v22 = vmul.f32 0.25, %v750_v20 }
 0x814   : > { %v692_v23 = vmul.f32 0.25, %v688_v21 }
 0x815   : > { %v755_v24 = vsel %vm252_vm4, %v754_v22, -1e+30 }
 0x816   : > { %v693_v25 = vsel %vm252_vm4, %v692_v23, -1e+30  ;;  %v756_v26 = vsel %vm332_vm5, %v755_v24, -inf  ;;  %v1302_v23 = vld [vmem:[%s1751_s4 + $0x68] sm:$0xff] }
 0x817   : > { %v694_v27 = vsel %vm332_vm5, %v693_v25, -inf  ;;  %757 = vmax.xlane.f32.xlu1 %v756_v26  ;;  %v1299_v26 = vld [vmem:[%s1751_s4 + $0x50] sm:$0xff] }
 0x818   : > { %695 = vmax.xlane.f32.xlu0 %v694_v27  ;;  %v1298_v27 = vld [vmem:[%s1751_s4 + $0x48] sm:$0xff] }
 0x81a   : > { %v752_v28 = vpop.f32.mrf.mxu0 }
 0x81b   : > { %v690_v31 = vpop.f32.mrf.mxu1  ;;  %v1297_v28 = vld [vmem:[%s1751_s4 + $0x40] sm:$0xff] }
 0x830   : > { %706 = vrot.lane.b32.xlu1 %v669_v14, %s1458_s26  ;;  %s1048_s26 = sshll.u32 %s241_s20, 4  ;;  %s1049_s26 = int_to_ptr.vmem [resolvable:$true] %s1048_s26 }
 0x88a   : > { %v758_v32 = vpop.xlane.xlu1 %757 }
 0x88b   : > { %v696_v33 = vpop.xlane.xlu0 %695  ;;  %v759_v34 = vsub.f32 %v755_v24, %v758_v32  ;;  %v1301_v24 = vld [vmem:[%s1751_s4 + $0x60] sm:$0xff] }
 0x88c   : > { %v697_v35 = vsub.f32 %v693_v25, %v696_v33  ;;  %v1300_v25 = vld [vmem:[%s1751_s4 + $0x58] sm:$0xff] }
 0x88d   : > { %v760_v36 = vmul.f32 1.442695, %v759_v34 }
 0x88e   : > { %v698_v37 = vmul.f32 1.442695, %v697_v35 }
 0x88f   : > { %1373 = vpow2.f32 %v760_v36 }
 0x890   : > { %1375 = vpow2.f32 %v698_v37 }
 0x895   : > { %v1374_v29 = vpop.eup %1373 }
 0x896   : > { %v1376_v30 = vpop.eup %1375  ;;  %v762_v38 = vsel %vm332_vm5, %v1374_v29, 0.0 }
 0x897   : > { %v700_v39 = vsel %vm332_vm5, %v1376_v30, 0.0  ;;  %763 = vadd.xlane.f32.xlu0 %v762_v38 }
 0x898   : > { %701 = vadd.xlane.f32.xlu2 %v700_v39 }
 0x8a2   : > { %v707_v40 = vpop.permute.xlu1 %706 }
 0x8a3   : > { %v712_v41 = vsel %vm350_vm6, %v707_v40, 0 }
 0x8a4   : > { %721 = vmatpush.bf16.msra.mxu3 %v712_v41 }
 0x8a8   : > { %808 = vmatpush.bf16.msrb.mxu3 %v1294_v53 }
 0x8ab   : > { %768 = vrot.lane.b32.xlu0 %v669_v14, %s1459_s28  ;;  %s1050_s28 = sshll.u32 %s1046_s19, 4  ;;  %s1051_s28 = int_to_ptr.hbm [resolvable:$true] %s1050_s28 }
 0x8ac   : > { %s1405_s17 = sshra.s32 %s1051_s28, 4  ;;  %s1406_s17 = int_to_ptr.hbm [resolvable:$true] %s1405_s17 }
 0x8ad   : > { %s1407_s29 = scalar_lea.hbm %s1406_s17, 1  ;;  %p1412_p0 = scmp.lt.s32.totalorder %s1406_s17, %s1753_s6 }
 0x8ae   : > { %p1408_p11 = scmp.ne.s32.totalorder %s1406_s17, %s1407_s29  ;;  %p1413_p1 = scmp.lt.s32.totalorder %s1411_s11, %s1407_s29 }
 0x8b0   : > { %p1409_p12 = pnand %p1408_p11, %p1533_p5  ;;  %p1414_p2 = por %p1413_p1, %p1412_p0 }
 0x8b2   : > { %p1410_p13 = pneg %p1409_p12 }
 0x8b4   : > { %p1415_p3 = pnand %p1414_p2, %p1410_p13 }
 0x90a   : > { %v764_v43 = vpop.xlane.xlu0 %763 }
 0x90b   : > { %v702_v42 = vpop.xlane.xlu2 %701 }
 0x90c   : > { %1377 = vrcp.f32 %v702_v42 }
 0x90d   : > { %1379 = vrcp.f32 %v764_v43 }
 0x912   : > { %v1378_v44 = vpop.eup %1377 }
 0x913   : > { %v704_v45 = vmul.f32 %v1378_v44, %v1376_v30  ;;  %v1380_v47 = vpop.eup %1379 }
 0x914   : > { %v766_v48 = vmul.f32 %v1380_v47, %v1374_v29  ;;  %v1305_v47 = vld [vmem:[%s1752_s5] sm:$0xff] }
 0x915   : > { %v705_v46 = vpack.c.bf16 %v704_v45, %v704_v45 }
 0x916   : > { %v767_v51 = vpack.c.bf16 %v766_v48, %v766_v48 }
 0x917   : > { %1188 = vmatmul.msk.bf16.vlgmr.msra.gmra.mxu3 %vm332_vm5, %v705_v46  ;;  %v1306_v46 = vld [vmem:[%s1752_s5 + $0x8] sm:$0xff] }
 0x918   : > { %1029 = vmatpush.bf16.msra.mxu3 %v1306_v46 }
 0x91c   : > { %1030 = vmatpush.bf16.msra.mxu3 %v1305_v47 }
 0x91d   : > { %v769_v49 = vpop.permute.xlu0 %768 }
 0x91e   : > { %v774_v50 = vsel %vm350_vm6, %v769_v49, 0 }
 0x91f   : > { %783 = vmatpush.bf16.msra.mxu1 %v774_v50 }
 0x922   : > { %1192 = vmatmul.msk.bf16.vlgmr.msra.gmra.mxu1 %vm332_vm5, %v767_v51 }
 0x99a   : > { %v723_v54 = vpop.f32.mrf.mxu3 }
 0x99b   : > { %v727_v56 = vpack.c.bf16 %v723_v54, %v723_v54 }
 0x99d   : > { %1204 = vmatmul.msk.bf16.vlgmr.msra.gmra.mxu2 %vm310_vm3, %v727_v56 }
 0x99f   : > { %v785_v57 = vpop.f32.mrf.mxu1 }
 0x9a0   : > { %v789_v58 = vpack.c.bf16 %v785_v57, %v785_v57 }
 0x9a2   : > { %v725_v59 = vpop.f32.mrf.mxu3  ;;  %1199 = vmatmul.msk.bf16.vlgmr.msrb.gmra.mxu3 %vm310_vm3, %v789_v58 }
 0x9a7   : > { %v787_v60 = vpop.f32.mrf.mxu1 }
 0xa20   : > { %v832_v61 = vpop.f32.mrf.mxu2 }
 0xa25   : > { %v810_v62 = vpop.f32.mrf.mxu3 }
 0xa26   : > { %v833_v63 = vadd.f32 %v832_v61, %v810_v62 }
 0xa28   : > { %v836_v1 = vadd.f32 %v833_v63, %v1631_v55  ;;  %v834_v2 = vpop.f32.mrf.mxu2  ;;  %v1304_v55 = vld [vmem:[%s1751_s4 + $0x78] sm:$0xff] }
 0xa29   : > { %965 = vmatpush.bf16.msrb.mxu1 %v1304_v55 }
 0xa2a   : > { %v837_v3 = vmul.f32 %v836_v1, %v836_v1 }
 0xa2c   : > { %v838_v4 = vsel %vm254_vm0, %v837_v3, 0.0 }
 0xa2d   : > { %839 = vadd.xlane.f32.xlu2 %v838_v4  ;;  %v812_v5 = vpop.f32.mrf.mxu3  ;;  %966 = vmatpush.bf16.msrb.mxu1 %v1303_v9 }
 0xa31   : > { %967 = vmatpush.bf16.msrb.mxu1 %v1302_v23 }
 0xa35   : > { %968 = vmatpush.bf16.msrb.mxu1 %v1301_v24 }
 0xa39   : > { %969 = vmatpush.bf16.msrb.mxu1 %v1300_v25 }
 0xa3d   : > { %970 = vmatpush.bf16.msrb.mxu1 %v1299_v26 }
 0xa41   : > { %971 = vmatpush.bf16.msrb.mxu1 %v1298_v27 }
 0xa45   : > { %972 = vmatpush.bf16.msrb.mxu1 %v1297_v28 }
 0xaa0   : > { %v840_v8 = vpop.xlane.xlu2 %839 }
 0xaa1   : > { %1381 = vrsqrt.f32 %v840_v8  ;;  %vm848_vm11 = vcmp.eq.f32.partialorder %v840_v8, inf  ;;  %v851_v17 = vand.u32 2147483648, %v840_v8  ;;  %vm850_vm12 = vcmp.eq.f32.partialorder %v840_v8, 0.0 }
 0xaa7   : > { %v1382_v10 = vpop.eup %1381 }
 0xaa8   : > { %v842_v11 = vmul.f32 %v1382_v10, %v840_v8 }
 0xaaa   : > { %v843_v12 = vmul.f32 %v1382_v10, %v842_v11 }
 0xaac   : > { %v844_v13 = vmul.f32 0.5, %v843_v12 }
 0xaae   : > { %v845_v14 = vsub.f32 1.5, %v844_v13 }
 0xab0   : > { %v846_v15 = vmul.f32 %v1382_v10, %v845_v14 }
 0xab2   : > { %v847_v16 = vmul.f32 %v846_v15, %v840_v8 }
 0xab4   : > { %v849_v18 = vsel %vm848_vm11, %v840_v8, %v847_v16 }
 0xab5   : > { %v852_v0 = vsel %vm850_vm12, %v851_v17, %v849_v18 }
 0xab6   : > { %v853_v19 = vmax.f32 %v852_v0, 1e-05 }
 0xab8   : > { %1383 = vrcp.f32 %v853_v19 }
 0xabe   : > { %v1384_v20 = vpop.eup %1383 }
 0xabf   : > { %v855_v21 = vmul.f32 %v1384_v20, %v836_v1 }
 0xac1   : > { %v856_v22 = vpack.c.bf16 %v855_v21, %v855_v21 }
 0xac3   : > { %1217 = vmatmul.msk.bf16.vlgmr.msra.gmra.mxu0 %vm254_vm0, %v856_v22 }
 0xb40   : > { %v886_v31 = vpop.f32.mrf.mxu0 }
 0xb41   : > { %v890_v32 = vmul.f32 %v886_v31, %v886_v31 }
 0xb43   : > { %v891_v33 = vmul.f32 %v890_v32, %v886_v31 }
 0xb45   : > { %v892_v34 = vmul.f32 0.044715, %v891_v33 }
 0xb47   : > { %v893_v35 = vadd.f32 %v892_v34, %v886_v31 }
 0xb48   : > { %v888_v36 = vpop.f32.mrf.mxu0 }
 0xb49   : > { %v894_v37 = vmul.f32 0.7978846, %v893_v35 }
 0xb4b   : > { %1385 = vtanh.f32 %v894_v37 }
 0xb51   : > { %v1386_v29 = vpop.eup %1385 }
 0xb52   : > { %v896_v30 = vadd.f32 1.0, %v1386_v29 }
 0xb54   : > { %v897_v38 = vmul.f32 0.5, %v896_v30 }
 0xb56   : > { %v898_v39 = vmul.f32 %v897_v38, %v886_v31 }
 0xb58   : > { %v899_v40 = vpack.c.bf16 %v898_v39, %v898_v39 }
 0xb5a   : > { %973 = vmatmul.bf16.vlgmr.msrb.gmra.mxu1 %v899_v40 }
 0xbd7   : > { %v974_v41 = vpop.f32.mrf.mxu1 }
 0xbd8   : > { %v978_v42 = vadd.f32 %v974_v41, %v836_v1 }
 0xbda   : > { %v979_v43 = vmul.f32 %v978_v42, %v978_v42 }
 0xbdc   : > { %v981_v44 = vsel %vm980_vm13, %v979_v43, 0.0 }
 0xbdd   : > { %982 = vadd.xlane.f32.xlu1 %v981_v44 }
 0xbdf   : > { %v976_v45 = vpop.f32.mrf.mxu1 }
 0xc50   : > { %v983_v48 = vpop.xlane.xlu1 %982 }
 0xc51   : > { %1387 = vrsqrt.f32 %v983_v48  ;;  %vm991_vm14 = vcmp.eq.f32.partialorder %v983_v48, inf  ;;  %v994_v57 = vand.u32 2147483648, %v983_v48  ;;  %vm993_vm15 = vcmp.eq.f32.partialorder %v983_v48, 0.0 }
 0xc57   : > { %v1388_v49 = vpop.eup %1387 }
 0xc58   : > { %v985_v50 = vmul.f32 %v1388_v49, %v983_v48 }
 0xc5a   : > { %v986_v51 = vmul.f32 %v1388_v49, %v985_v50 }
 0xc5c   : > { %v987_v52 = vmul.f32 0.5, %v986_v51 }
 0xc5e   : > { %v988_v53 = vsub.f32 1.5, %v987_v52 }
 0xc60   : > { %v989_v54 = vmul.f32 %v1388_v49, %v988_v53 }
 0xc62   : > { %v990_v56 = vmul.f32 %v989_v54, %v983_v48 }
 0xc64   : > { %v992_v58 = vsel %vm991_vm14, %v983_v48, %v990_v56 }
 0xc65   : > { %v995_v59 = vsel %vm993_vm15, %v994_v57, %v992_v58 }
 0xc66   : > { %v996_v60 = vmax.f32 %v995_v59, 1e-05 }
 0xc68   : > { %1389 = vrcp.f32 %v996_v60 }
 0xc6e   : > { %v1390_v61 = vpop.eup %1389 }
 0xc6f   : > { %v998_v62 = vmul.f32 %v1390_v61, %v978_v42 }
 0xc71   : > { %v999_v63 = vpack.c.bf16 %v998_v62, %v998_v62 }
 0xc73   : > { %v1005_v1 = vshrl.u32 %v999_v63, 16 }
 0xc75   : > { %v1007_v2 = vrot.slane %v1005_v1, 3 }
 0xc77   : > { %1274 = vmatmul.msk.bf16.vlgmr.msra.gmra.mxu3 %vm254_vm0, %v1007_v2 }
 0xcfa   : > { %v1032_v3 = vpop.f32.mrf.mxu3 }
 0xcfb   : > { %1036 = vst [vmem:[%s241_s20] sm:$0x1] %v1032_v3 }
 0xcfc   : > { %1418 = shalt.err (!%p1415_p3)
}
 0xcfd   : > { %1307 = dma.vmem_to_hbm [thread:$0]  (%p1533_p5), %s1049_s26, 16, %s1051_s28, %s1038_s16  }
 0xd02   : > { %v1034_v4 = vpop.f32.mrf.mxu3 }
 0xd03 PF: > { %p1313_p4 = scmp.ge.s32.totalorder %s1453_s24, 2  ;;  %s1062_s13 = sand.u32 1, %s1441_s21  }
 0xd04   : > { %s1063_s14 = scalar_lea.sflag [#allocation3], %s1062_s13 }
 0xd05   : > { %p1310_p7 = pnand %p1313_p4, %p1537_p6 }
 0xd07   : > { %p1311_p8 = pneg %p1310_p7 }
 0xd09   : > { %1436 = dma.done.wait (%p1311_p8), %s1063_s14, 16  }
 0xd0a   : > { %1438 = vsyncadd (%p1311_p8), %s1063_s14, 4294967280  ;;  %p16_p9 = scmp.ge.s32.totalorder %s1520_s27, 4   ;;  %s1756_s21 = smov %s1445_s22 }
 0xd0b   : > { %s1757_s22 = smov %s1449_s23  ;;  %s1758_s23 = smov %s1531_s30 }
 0xd0c   : > { %s1759_s24 = smov %s1520_s27  ;;  %18 = sbr.rel (!%p16_p9) target bundleno = 3 (0x3), region = 83 }
 0xd11   :  { %1068 = vsyncpa [#allocation3], 1 }
 0xd12   :  { %1070 = vsyncpa [#allocation3 + $0x1], 1 }

</bundles_post_ra>
